<compile_context>
chip_gen: v7x
topology: tpu7x:2x2x1
jax: 0.10.0
libtpu: 0.0.40
codegen_flags: <defaults>
</compile_context>

<pallas_src>
import functools

import jax
import jax.numpy as jnp
from jax import lax
from jax.experimental import pallas as pl
from jax.experimental.pallas import tpu as pltpu


def _round_up(x, m):
    return ((x + m - 1) // m) * m


# ---------------------------------------------------------------------------
# in-kernel helpers (traced into the kernel body)
# ---------------------------------------------------------------------------
def _side_loss(d, img3, d_halo, img3_halo, col_mask, row_mask, is_last_row):
    """Per-pixel smoothness loss (f32) for one stereo side.

    d:          (TH, WP)      disparity tile (native dtype)
    img3:       (3, TH, WP)   RGB tile (native dtype)
    d_halo:     (1, WP)       first disparity row of the next H-tile
    img3_halo:  (3, 1, WP)    first RGB row of the next H-tile
    col_mask:   (TH, WP) bool True where grad_x must be zero (col >= W-1)
    row_mask:   (TH, WP) bool True where grad_y must be zero (global row >= H-1)
    is_last_row:(TH, WP) bool True on the last local row of the tile (seam)
    """
    th, wp = d.shape

    # ---- disparity gradients (roll in the XLU slot, masks on the VPU) ----
    d_sx = pltpu.roll(d, shift=wp - 1, axis=1)          # d[:, j+1 (mod wp)]
    dgx = jnp.where(col_mask, 0.0, d - d_sx)

    d_sy = pltpu.roll(d, shift=th - 1, axis=0)          # d[i+1 (mod th), :]
    d_sy = jnp.where(is_last_row, d_halo, d_sy)         # fix the tile seam
    dgy = jnp.where(row_mask, 0.0, d - d_sy)

    # ---- image-gradient magnitudes, summed over the 3 channels ----
    sx = None
    sy = None
    for ch in range(3):
        c = img3[ch]
        c_sx = pltpu.roll(c, shift=wp - 1, axis=1)
        c_sy = pltpu.roll(c, shift=th - 1, axis=0)
        c_sy = jnp.where(is_last_row, img3_halo[ch], c_sy)
        ax = jnp.abs(c - c_sx).astype(jnp.float32)
        ay = jnp.abs(c - c_sy).astype(jnp.float32)
        sx = ax if sx is None else sx + ax
        sy = ay if sy is None else sy + ay

    # fold the channel mean and the negation into one multiply: exp(-sum/3)
    wx = jnp.exp(sx * (-1.0 / 3.0))
    wy = jnp.exp(sy * (-1.0 / 3.0))

    return jnp.abs(dgx).astype(jnp.float32) * wx + jnp.abs(dgy).astype(jnp.float32) * wy


def _fold_partial(x):
    """Fold an (TH, WP) f32 tile into an (8, 128) partial sum with pure VPU adds
    (no cross-lane/sublane reductions)."""
    th, wp = x.shape
    col = x[:, 0:128]
    for c in range(1, wp // 128):
        col = col + x[:, c * 128:(c + 1) * 128]
    acc = col[0:8, :]
    for r in range(1, th // 8):
        acc = acc + col[r * 8:(r + 1) * 8, :]
    return acc


# ---------------------------------------------------------------------------
# kernel: grid = (B, H // TILE_H); each step writes its own (8,128) partial
# ---------------------------------------------------------------------------
def _smoothness_kernel(disp_ref, img_ref, disp_halo_ref, img_halo_ref, out_ref,
                       *, true_h, true_w, tile_h):
    th = tile_h
    wp = disp_ref.shape[-1]

    col_ids = lax.broadcasted_iota(jnp.int32, (th, wp), 1)
    row_loc = lax.broadcasted_iota(jnp.int32, (th, wp), 0)
    row_glb = row_loc + pl.program_id(1) * th

    col_mask = col_ids >= (true_w - 1)       # grad_x == 0 at/after true last col
    row_mask = row_glb >= (true_h - 1)       # grad_y == 0 at/after true last row
    is_last_row = row_loc == (th - 1)        # tile seam -> use halo row

    disp = disp_ref[0]                       # (2, TH, WP)
    img = img_ref[0]                         # (6, TH, WP)
    dh = disp_halo_ref[0]                    # (2, 8, WP) -- row 0 is the halo row
    ih = img_halo_ref[0]                     # (6, 8, WP)

    dh_l = dh[0, 0:1, :]                     # (1, WP)
    dh_r = dh[1, 0:1, :]
    ih_l = ih[0:3, 0:1, :]                   # (3, 1, WP)
    ih_r = ih[3:6, 0:1, :]

    left = _side_loss(disp[0], img[0:3], dh_l, ih_l, col_mask, row_mask, is_last_row)
    right = _side_loss(disp[1], img[3:6], dh_r, ih_r, col_mask, row_mask, is_last_row)

    out_ref[0, 0] = _fold_partial(left + right)


# ---------------------------------------------------------------------------
# wrapper
# ---------------------------------------------------------------------------
def smoothness_loss(disp, images, *, tile_h=128):
    """Pallas implementation of SmoothnessLoss.forward."""
    B, c_d, H, W = disp.shape
    assert c_d == 2 and images.shape == (B, 6, H, W)

    # Lane-dense width; zero padding contributes exactly 0 to the loss.
    Wp = _round_up(W, 128)

    # Row-tile size: multiple of 8, capped so the double-buffered input tiles +
    # f32 intermediates stay well under the default scoped VMEM limit on all
    # generations (incl. v7x's 64 MiB physical VMEM).
    max_tile_elems = 128 * 1024
    cap = max(8, (max_tile_elems // Wp) // 8 * 8)
    th = max(8, min(_round_up(tile_h, 8), _round_up(H, 8), cap))
    Hp = _round_up(H, th)
    n_h = Hp // th

    pad_h, pad_w = Hp - H, Wp - W
    if pad_h or pad_w:
        cfg = ((0, 0), (0, 0), (0, pad_h), (0, pad_w))
        disp_p = jnp.pad(disp, cfg)
        images_p = jnp.pad(images, cfg)
    else:
        disp_p, images_p = disp, images

    kernel = functools.partial(_smoothness_kernel,
                               true_h=H, true_w=W, tile_h=th)

    # Halo blocks: 8 aligned rows starting at the first row of the NEXT tile
    # (clamped for the last tile; that seam row is masked anyway).
    n_row_blocks = Hp // 8
    halo_map = lambda b, h: (b, 0, jnp.minimum((h + 1) * (th // 8), n_row_blocks - 1), 0)

    partials = pl.pallas_call(
        kernel,
        out_shape=jax.ShapeDtypeStruct((B, n_h, 8, 128), jnp.float32),
        grid_spec=pltpu.PrefetchScalarGridSpec(
            num_scalar_prefetch=0,
            grid=(B, n_h),
            in_specs=[
                pl.BlockSpec((1, 2, th, Wp), lambda b, h: (b, 0, h, 0)),
                pl.BlockSpec((1, 6, th, Wp), lambda b, h: (b, 0, h, 0)),
                pl.BlockSpec((1, 2, 8, Wp), halo_map),
                pl.BlockSpec((1, 6, 8, Wp), halo_map),
            ],
            out_specs=pl.BlockSpec((1, 1, 8, 128), lambda b, h: (b, h, 0, 0)),
        ),
        compiler_params=pltpu.CompilerParams(
            dimension_semantics=("parallel", "parallel")),
    )(disp_p, images_p, disp_p, images_p)

    # Final tree-reduce of the lane-dense partials + mean normalisation.
    return jnp.sum(partials) / jnp.float32(B * H * W)


# ---------------------------------------------------------------------------
# pure-JAX reference (for correctness check only)
# ---------------------------------------------------------------------------
def _ref_smoothness_loss(disp, images):
    def gx(x):
        return jnp.concatenate([x[..., :-1] - x[..., 1:],
                                jnp.zeros(x.shape[:-1] + (1,), x.dtype)], axis=-1)

    def gy(x):
        return jnp.concatenate([x[..., :-1, :] - x[..., 1:, :],
                                jnp.zeros(x.shape[:-2] + (1, x.shape[-1]), x.dtype)],
                               axis=-2)

    def side(d, im):
        wx = jnp.exp(-jnp.mean(jnp.abs(gx(im)), axis=1, keepdims=True))
        wy = jnp.exp(-jnp.mean(jnp.abs(gy(im)), axis=1, keepdims=True))
        return jnp.abs(gx(d) * wx) + jnp.abs(gy(d) * wy)

    left = side(disp[:, 0:1], images[:, 0:3])
    right = side(disp[:, 1:2], images[:, 3:6])
    return jnp.mean(left + right)


if __name__ == "__main__":
    key = jax.random.PRNGKey(0)

    # Case 1: small single-tile case (exercises W padding + boundary masks).
    k1, k2, k3, k4 = jax.random.split(key, 4)
    B, H, W = 2, 16, 16
    disp = jax.random.uniform(k1, (B, 2, H, W), dtype=jnp.float32)
    images = jax.random.uniform(k2, (B, 6, H, W), dtype=jnp.float32)
    out = jax.block_until_ready(smoothness_loss(disp, images))
    ref = _ref_smoothness_loss(disp, images)
    assert jnp.allclose(out, ref, rtol=1e-5, atol=1e-6), (out, ref)

    # Case 2: multi-H-tile case with a non-divisible H (exercises the grad_y
    # halo seam, row padding and the parallel per-tile partial sums).
    B2, H2, W2 = 2, 20, 16
    disp2 = jax.random.uniform(k3, (B2, 2, H2, W2), dtype=jnp.float32)
    images2 = jax.random.uniform(k4, (B2, 6, H2, W2), dtype=jnp.float32)
    out2 = jax.block_until_ready(smoothness_loss(disp2, images2, tile_h=8))
    ref2 = _ref_smoothness_loss(disp2, images2)
    assert jnp.allclose(out2, ref2, rtol=1e-5, atol=1e-6), (out2, ref2)

    print("KERNEL_OK")
</pallas_src>

<mosaic_0001>
module attributes {stable_mosaic.version = 11 : i64} {
  func.func @_smoothness_kernel(%arg0: i32, %arg1: i32, %arg2: memref<1x2x16x128xf32, #tpu.memory_space<vmem>>, %arg3: memref<1x6x16x128xf32, #tpu.memory_space<vmem>>, %arg4: memref<1x2x8x128xf32, #tpu.memory_space<vmem>>, %arg5: memref<1x6x8x128xf32, #tpu.memory_space<vmem>>, %arg6: memref<1x1x8x128xf32, #tpu.memory_space<vmem>>) attributes {dimension_semantics = [#tpu.dimension_semantics<parallel>, #tpu.dimension_semantics<parallel>], iteration_bounds = array<i64: 2, 1>, scalar_prefetch = 0 : i64, scratch_operands = 0 : i64, tpu.core_type = #tpu.core_type<tc>, window_params = [{transform_indices = @transform_0, window_bounds = array<i64: 1, 2, 16, 128>}, {transform_indices = @transform_1, window_bounds = array<i64: 1, 6, 16, 128>}, {transform_indices = @transform_2, window_bounds = array<i64: 1, 2, 8, 128>}, {transform_indices = @transform_3, window_bounds = array<i64: 1, 6, 8, 128>}, {transform_indices = @transform_4, window_bounds = array<i64: 1, 1, 8, 128>}]} {
    %0 = tpu.iota {dimensions = array<i32: 1>} : vector<16x128xi32>
    %1 = tpu.iota {dimensions = array<i32: 0>} : vector<16x128xi32>
    %c16_i32 = arith.constant 16 : i32
    %2 = arith.muli %arg1, %c16_i32 : i32
    %3 = vector.broadcast %2 : i32 to vector<16x128xi32>
    %4 = arith.addi %1, %3 : vector<16x128xi32>
    %c15_i32 = arith.constant 15 : i32
    %5 = vector.broadcast %c15_i32 : i32 to vector<16x128xi32>
    %6 = arith.cmpi sge, %0, %5 : vector<16x128xi32>
    %c15_i32_0 = arith.constant 15 : i32
    %7 = vector.broadcast %c15_i32_0 : i32 to vector<16x128xi32>
    %8 = arith.cmpi sge, %4, %7 : vector<16x128xi32>
    %c15_i32_1 = arith.constant 15 : i32
    %9 = vector.broadcast %c15_i32_1 : i32 to vector<16x128xi32>
    %10 = arith.cmpi eq, %1, %9 : vector<16x128xi32>
    %c0 = arith.constant 0 : index
    %c0_2 = arith.constant 0 : index
    %c0_3 = arith.constant 0 : index
    %c0_4 = arith.constant 0 : index
    %11 = vector.load %arg2[%c0, %c0_2, %c0_3, %c0_4] : memref<1x2x16x128xf32, #tpu.memory_space<vmem>>, vector<1x2x16x128xf32>
    %12 = vector.shape_cast %11 : vector<1x2x16x128xf32> to vector<2x16x128xf32>
    %c0_5 = arith.constant 0 : index
    %c0_6 = arith.constant 0 : index
    %c0_7 = arith.constant 0 : index
    %c0_8 = arith.constant 0 : index
    %13 = vector.load %arg3[%c0_5, %c0_6, %c0_7, %c0_8] : memref<1x6x16x128xf32, #tpu.memory_space<vmem>>, vector<1x6x16x128xf32>
    %14 = vector.shape_cast %13 : vector<1x6x16x128xf32> to vector<6x16x128xf32>
    %c0_9 = arith.constant 0 : index
    %c0_10 = arith.constant 0 : index
    %c0_11 = arith.constant 0 : index
    %c0_12 = arith.constant 0 : index
    %15 = vector.load %arg4[%c0_9, %c0_10, %c0_11, %c0_12] : memref<1x2x8x128xf32, #tpu.memory_space<vmem>>, vector<1x2x8x128xf32>
    %16 = vector.shape_cast %15 : vector<1x2x8x128xf32> to vector<2x8x128xf32>
    %c0_13 = arith.constant 0 : index
    %c0_14 = arith.constant 0 : index
    %c0_15 = arith.constant 0 : index
    %c0_16 = arith.constant 0 : index
    %17 = vector.load %arg5[%c0_13, %c0_14, %c0_15, %c0_16] : memref<1x6x8x128xf32, #tpu.memory_space<vmem>>, vector<1x6x8x128xf32>
    %18 = vector.shape_cast %17 : vector<1x6x8x128xf32> to vector<6x8x128xf32>
    %19 = vector.extract_strided_slice %16 {offsets = [0, 0, 0], sizes = [1, 1, 128], strides = [1, 1, 1]} : vector<2x8x128xf32> to vector<1x1x128xf32>
    %20 = vector.shape_cast %19 : vector<1x1x128xf32> to vector<1x128xf32>
    %21 = vector.extract_strided_slice %16 {offsets = [1, 0, 0], sizes = [1, 1, 128], strides = [1, 1, 1]} : vector<2x8x128xf32> to vector<1x1x128xf32>
    %22 = vector.shape_cast %21 : vector<1x1x128xf32> to vector<1x128xf32>
    %23 = vector.extract_strided_slice %18 {offsets = [0, 0, 0], sizes = [3, 1, 128], strides = [1, 1, 1]} : vector<6x8x128xf32> to vector<3x1x128xf32>
    %24 = vector.extract_strided_slice %18 {offsets = [3, 0, 0], sizes = [3, 1, 128], strides = [1, 1, 1]} : vector<6x8x128xf32> to vector<3x1x128xf32>
    %25 = vector.extract_strided_slice %12 {offsets = [0, 0, 0], sizes = [1, 16, 128], strides = [1, 1, 1]} : vector<2x16x128xf32> to vector<1x16x128xf32>
    %26 = vector.shape_cast %25 : vector<1x16x128xf32> to vector<16x128xf32>
    %27 = vector.extract_strided_slice %14 {offsets = [0, 0, 0], sizes = [3, 16, 128], strides = [1, 1, 1]} : vector<6x16x128xf32> to vector<3x16x128xf32>
    %c127_i32 = arith.constant 127 : i32
    %28 = tpu.dynamic_rotate %26 by %c127_i32 dim 1 : vector<16x128xf32>, i32 -> vector<16x128xf32>
    %29 = arith.subf %26, %28 : vector<16x128xf32>
    %cst = arith.constant 0.000000e+00 : f32
    %30 = vector.broadcast %cst : f32 to vector<16x128xf32>
    %31 = arith.select %6, %30, %29 : vector<16x128xi1>, vector<16x128xf32>
    %c15_i32_17 = arith.constant 15 : i32
    %32 = tpu.dynamic_rotate %26 by %c15_i32_17 dim 0 : vector<16x128xf32>, i32 -> vector<16x128xf32>
    %33 = vector.shape_cast %20 : vector<1x128xf32> to vector<1x128xf32>
    %34 = vector.broadcast %33 : vector<1x128xf32> to vector<16x128xf32>
    %35 = arith.select %10, %34, %32 : vector<16x128xi1>, vector<16x128xf32>
    %36 = arith.subf %26, %35 : vector<16x128xf32>
    %cst_18 = arith.constant 0.000000e+00 : f32
    %37 = vector.broadcast %cst_18 : f32 to vector<16x128xf32>
    %38 = arith.select %8, %37, %36 : vector<16x128xi1>, vector<16x128xf32>
    %39 = vector.extract_strided_slice %27 {offsets = [0, 0, 0], sizes = [1, 16, 128], strides = [1, 1, 1]} : vector<3x16x128xf32> to vector<1x16x128xf32>
    %40 = vector.shape_cast %39 : vector<1x16x128xf32> to vector<16x128xf32>
    %c127_i32_19 = arith.constant 127 : i32
    %41 = tpu.dynamic_rotate %40 by %c127_i32_19 dim 1 : vector<16x128xf32>, i32 -> vector<16x128xf32>
    %c15_i32_20 = arith.constant 15 : i32
    %42 = tpu.dynamic_rotate %40 by %c15_i32_20 dim 0 : vector<16x128xf32>, i32 -> vector<16x128xf32>
    %43 = vector.extract_strided_slice %23 {offsets = [0, 0, 0], sizes = [1, 1, 128], strides = [1, 1, 1]} : vector<3x1x128xf32> to vector<1x1x128xf32>
    %44 = vector.shape_cast %43 : vector<1x1x128xf32> to vector<1x128xf32>
    %45 = vector.shape_cast %44 : vector<1x128xf32> to vector<1x128xf32>
    %46 = vector.broadcast %45 : vector<1x128xf32> to vector<16x128xf32>
    %47 = arith.select %10, %46, %42 : vector<16x128xi1>, vector<16x128xf32>
    %48 = arith.subf %40, %41 : vector<16x128xf32>
    %49 = math.absf %48 : vector<16x128xf32>
    %50 = arith.subf %40, %47 : vector<16x128xf32>
    %51 = math.absf %50 : vector<16x128xf32>
    %52 = vector.extract_strided_slice %27 {offsets = [1, 0, 0], sizes = [1, 16, 128], strides = [1, 1, 1]} : vector<3x16x128xf32> to vector<1x16x128xf32>
    %53 = vector.shape_cast %52 : vector<1x16x128xf32> to vector<16x128xf32>
    %c127_i32_21 = arith.constant 127 : i32
    %54 = tpu.dynamic_rotate %53 by %c127_i32_21 dim 1 : vector<16x128xf32>, i32 -> vector<16x128xf32>
    %c15_i32_22 = arith.constant 15 : i32
    %55 = tpu.dynamic_rotate %53 by %c15_i32_22 dim 0 : vector<16x128xf32>, i32 -> vector<16x128xf32>
    %56 = vector.extract_strided_slice %23 {offsets = [1, 0, 0], sizes = [1, 1, 128], strides = [1, 1, 1]} : vector<3x1x128xf32> to vector<1x1x128xf32>
    %57 = vector.shape_cast %56 : vector<1x1x128xf32> to vector<1x128xf32>
    %58 = vector.shape_cast %57 : vector<1x128xf32> to vector<1x128xf32>
    %59 = vector.broadcast %58 : vector<1x128xf32> to vector<16x128xf32>
    %60 = arith.select %10, %59, %55 : vector<16x128xi1>, vector<16x128xf32>
    %61 = arith.subf %53, %54 : vector<16x128xf32>
    %62 = math.absf %61 : vector<16x128xf32>
    %63 = arith.subf %53, %60 : vector<16x128xf32>
    %64 = math.absf %63 : vector<16x128xf32>
    %65 = arith.addf %49, %62 : vector<16x128xf32>
    %66 = arith.addf %51, %64 : vector<16x128xf32>
    %67 = vector.extract_strided_slice %27 {offsets = [2, 0, 0], sizes = [1, 16, 128], strides = [1, 1, 1]} : vector<3x16x128xf32> to vector<1x16x128xf32>
    %68 = vector.shape_cast %67 : vector<1x16x128xf32> to vector<16x128xf32>
    %c127_i32_23 = arith.constant 127 : i32
    %69 = tpu.dynamic_rotate %68 by %c127_i32_23 dim 1 : vector<16x128xf32>, i32 -> vector<16x128xf32>
    %c15_i32_24 = arith.constant 15 : i32
    %70 = tpu.dynamic_rotate %68 by %c15_i32_24 dim 0 : vector<16x128xf32>, i32 -> vector<16x128xf32>
    %71 = vector.extract_strided_slice %23 {offsets = [2, 0, 0], sizes = [1, 1, 128], strides = [1, 1, 1]} : vector<3x1x128xf32> to vector<1x1x128xf32>
    %72 = vector.shape_cast %71 : vector<1x1x128xf32> to vector<1x128xf32>
    %73 = vector.shape_cast %72 : vector<1x128xf32> to vector<1x128xf32>
    %74 = vector.broadcast %73 : vector<1x128xf32> to vector<16x128xf32>
    %75 = arith.select %10, %74, %70 : vector<16x128xi1>, vector<16x128xf32>
    %76 = arith.subf %68, %69 : vector<16x128xf32>
    %77 = math.absf %76 : vector<16x128xf32>
    %78 = arith.subf %68, %75 : vector<16x128xf32>
    %79 = math.absf %78 : vector<16x128xf32>
    %80 = arith.addf %65, %77 : vector<16x128xf32>
    %81 = arith.addf %66, %79 : vector<16x128xf32>
    %cst_25 = arith.constant -0.333333343 : f32
    %82 = vector.broadcast %cst_25 : f32 to vector<16x128xf32>
    %83 = arith.mulf %80, %82 : vector<16x128xf32>
    %84 = math.exp %83 : vector<16x128xf32>
    %cst_26 = arith.constant -0.333333343 : f32
    %85 = vector.broadcast %cst_26 : f32 to vector<16x128xf32>
    %86 = arith.mulf %81, %85 : vector<16x128xf32>
    %87 = math.exp %86 : vector<16x128xf32>
    %88 = math.absf %31 : vector<16x128xf32>
    %89 = arith.mulf %88, %84 : vector<16x128xf32>
    %90 = math.absf %38 : vector<16x128xf32>
    %91 = arith.mulf %90, %87 : vector<16x128xf32>
    %92 = arith.addf %89, %91 : vector<16x128xf32>
    %93 = vector.extract_strided_slice %12 {offsets = [1, 0, 0], sizes = [1, 16, 128], strides = [1, 1, 1]} : vector<2x16x128xf32> to vector<1x16x128xf32>
    %94 = vector.shape_cast %93 : vector<1x16x128xf32> to vector<16x128xf32>
    %95 = vector.extract_strided_slice %14 {offsets = [3, 0, 0], sizes = [3, 16, 128], strides = [1, 1, 1]} : vector<6x16x128xf32> to vector<3x16x128xf32>
    %c127_i32_27 = arith.constant 127 : i32
    %96 = tpu.dynamic_rotate %94 by %c127_i32_27 dim 1 : vector<16x128xf32>, i32 -> vector<16x128xf32>
    %97 = arith.subf %94, %96 : vector<16x128xf32>
    %cst_28 = arith.constant 0.000000e+00 : f32
    %98 = vector.broadcast %cst_28 : f32 to vector<16x128xf32>
    %99 = arith.select %6, %98, %97 : vector<16x128xi1>, vector<16x128xf32>
    %c15_i32_29 = arith.constant 15 : i32
    %100 = tpu.dynamic_rotate %94 by %c15_i32_29 dim 0 : vector<16x128xf32>, i32 -> vector<16x128xf32>
    %101 = vector.shape_cast %22 : vector<1x128xf32> to vector<1x128xf32>
    %102 = vector.broadcast %101 : vector<1x128xf32> to vector<16x128xf32>
    %103 = arith.select %10, %102, %100 : vector<16x128xi1>, vector<16x128xf32>
    %104 = arith.subf %94, %103 : vector<16x128xf32>
    %cst_30 = arith.constant 0.000000e+00 : f32
    %105 = vector.broadcast %cst_30 : f32 to vector<16x128xf32>
    %106 = arith.select %8, %105, %104 : vector<16x128xi1>, vector<16x128xf32>
    %107 = vector.extract_strided_slice %95 {offsets = [0, 0, 0], sizes = [1, 16, 128], strides = [1, 1, 1]} : vector<3x16x128xf32> to vector<1x16x128xf32>
    %108 = vector.shape_cast %107 : vector<1x16x128xf32> to vector<16x128xf32>
    %c127_i32_31 = arith.constant 127 : i32
    %109 = tpu.dynamic_rotate %108 by %c127_i32_31 dim 1 : vector<16x128xf32>, i32 -> vector<16x128xf32>
    %c15_i32_32 = arith.constant 15 : i32
    %110 = tpu.dynamic_rotate %108 by %c15_i32_32 dim 0 : vector<16x128xf32>, i32 -> vector<16x128xf32>
    %111 = vector.extract_strided_slice %24 {offsets = [0, 0, 0], sizes = [1, 1, 128], strides = [1, 1, 1]} : vector<3x1x128xf32> to vector<1x1x128xf32>
    %112 = vector.shape_cast %111 : vector<1x1x128xf32> to vector<1x128xf32>
    %113 = vector.shape_cast %112 : vector<1x128xf32> to vector<1x128xf32>
    %114 = vector.broadcast %113 : vector<1x128xf32> to vector<16x128xf32>
    %115 = arith.select %10, %114, %110 : vector<16x128xi1>, vector<16x128xf32>
    %116 = arith.subf %108, %109 : vector<16x128xf32>
    %117 = math.absf %116 : vector<16x128xf32>
    %118 = arith.subf %108, %115 : vector<16x128xf32>
    %119 = math.absf %118 : vector<16x128xf32>
    %120 = vector.extract_strided_slice %95 {offsets = [1, 0, 0], sizes = [1, 16, 128], strides = [1, 1, 1]} : vector<3x16x128xf32> to vector<1x16x128xf32>
    %121 = vector.shape_cast %120 : vector<1x16x128xf32> to vector<16x128xf32>
    %c127_i32_33 = arith.constant 127 : i32
    %122 = tpu.dynamic_rotate %121 by %c127_i32_33 dim 1 : vector<16x128xf32>, i32 -> vector<16x128xf32>
    %c15_i32_34 = arith.constant 15 : i32
    %123 = tpu.dynamic_rotate %121 by %c15_i32_34 dim 0 : vector<16x128xf32>, i32 -> vector<16x128xf32>
    %124 = vector.extract_strided_slice %24 {offsets = [1, 0, 0], sizes = [1, 1, 128], strides = [1, 1, 1]} : vector<3x1x128xf32> to vector<1x1x128xf32>
    %125 = vector.shape_cast %124 : vector<1x1x128xf32> to vector<1x128xf32>
    %126 = vector.shape_cast %125 : vector<1x128xf32> to vector<1x128xf32>
    %127 = vector.broadcast %126 : vector<1x128xf32> to vector<16x128xf32>
    %128 = arith.select %10, %127, %123 : vector<16x128xi1>, vector<16x128xf32>
    %129 = arith.subf %121, %122 : vector<16x128xf32>
    %130 = math.absf %129 : vector<16x128xf32>
    %131 = arith.subf %121, %128 : vector<16x128xf32>
    %132 = math.absf %131 : vector<16x128xf32>
    %133 = arith.addf %117, %130 : vector<16x128xf32>
    %134 = arith.addf %119, %132 : vector<16x128xf32>
    %135 = vector.extract_strided_slice %95 {offsets = [2, 0, 0], sizes = [1, 16, 128], strides = [1, 1, 1]} : vector<3x16x128xf32> to vector<1x16x128xf32>
    %136 = vector.shape_cast %135 : vector<1x16x128xf32> to vector<16x128xf32>
    %c127_i32_35 = arith.constant 127 : i32
    %137 = tpu.dynamic_rotate %136 by %c127_i32_35 dim 1 : vector<16x128xf32>, i32 -> vector<16x128xf32>
    %c15_i32_36 = arith.constant 15 : i32
    %138 = tpu.dynamic_rotate %136 by %c15_i32_36 dim 0 : vector<16x128xf32>, i32 -> vector<16x128xf32>
    %139 = vector.extract_strided_slice %24 {offsets = [2, 0, 0], sizes = [1, 1, 128], strides = [1, 1, 1]} : vector<3x1x128xf32> to vector<1x1x128xf32>
    %140 = vector.shape_cast %139 : vector<1x1x128xf32> to vector<1x128xf32>
    %141 = vector.shape_cast %140 : vector<1x128xf32> to vector<1x128xf32>
    %142 = vector.broadcast %141 : vector<1x128xf32> to vector<16x128xf32>
    %143 = arith.select %10, %142, %138 : vector<16x128xi1>, vector<16x128xf32>
    %144 = arith.subf %136, %137 : vector<16x128xf32>
    %145 = math.absf %144 : vector<16x128xf32>
    %146 = arith.subf %136, %143 : vector<16x128xf32>
    %147 = math.absf %146 : vector<16x128xf32>
    %148 = arith.addf %133, %145 : vector<16x128xf32>
    %149 = arith.addf %134, %147 : vector<16x128xf32>
    %cst_37 = arith.constant -0.333333343 : f32
    %150 = vector.broadcast %cst_37 : f32 to vector<16x128xf32>
    %151 = arith.mulf %148, %150 : vector<16x128xf32>
    %152 = math.exp %151 : vector<16x128xf32>
    %cst_38 = arith.constant -0.333333343 : f32
    %153 = vector.broadcast %cst_38 : f32 to vector<16x128xf32>
    %154 = arith.mulf %149, %153 : vector<16x128xf32>
    %155 = math.exp %154 : vector<16x128xf32>
    %156 = math.absf %99 : vector<16x128xf32>
    %157 = arith.mulf %156, %152 : vector<16x128xf32>
    %158 = math.absf %106 : vector<16x128xf32>
    %159 = arith.mulf %158, %155 : vector<16x128xf32>
    %160 = arith.addf %157, %159 : vector<16x128xf32>
    %161 = arith.addf %92, %160 : vector<16x128xf32>
    %162 = vector.extract_strided_slice %161 {offsets = [0, 0], sizes = [8, 128], strides = [1, 1]} : vector<16x128xf32> to vector<8x128xf32>
    %163 = vector.extract_strided_slice %161 {offsets = [8, 0], sizes = [8, 128], strides = [1, 1]} : vector<16x128xf32> to vector<8x128xf32>
    %164 = arith.addf %162, %163 : vector<8x128xf32>
    %c0_39 = arith.constant 0 : index
    %c0_40 = arith.constant 0 : index
    %c0_41 = arith.constant 0 : index
    %c0_42 = arith.constant 0 : index
    %165 = vector.load %arg6[%c0_39, %c0_40, %c0_41, %c0_42] : memref<1x1x8x128xf32, #tpu.memory_space<vmem>>, vector<1x1x8x128xf32>
    %166 = vector.shape_cast %165 : vector<1x1x8x128xf32> to vector<8x128xf32>
    %167 = vector.shape_cast %164 : vector<8x128xf32> to vector<1x1x8x128xf32>
    tpu.vector_store %arg6[%c0_39, %c0_40, %c0_41, %c0_42], %167 {strides = array<i32>} : memref<1x1x8x128xf32, #tpu.memory_space<vmem>>, vector<1x1x8x128xf32>,
    return
  }
  func.func @transform_0(%arg0: i32, %arg1: i32) -> (i32, i32, i32, i32) {
    %c0_i32 = arith.constant 0 : i32
    %c0_i32_0 = arith.constant 0 : i32
    %c0_i32_1 = arith.constant 0 : i32
    return %arg0, %c0_i32, %arg1, %c0_i32_0 : i32, i32, i32, i32
  }
  func.func @transform_1(%arg0: i32, %arg1: i32) -> (i32, i32, i32, i32) {
    %c0_i32 = arith.constant 0 : i32
    %c0_i32_0 = arith.constant 0 : i32
    %c0_i32_1 = arith.constant 0 : i32
    return %arg0, %c0_i32, %arg1, %c0_i32_0 : i32, i32, i32, i32
  }
  func.func @transform_2(%arg0: i32, %arg1: i32) -> (i32, i32, i32, i32) {
    %c1_i32 = arith.constant 1 : i32
    %0 = arith.addi %arg1, %c1_i32 : i32
    %c2_i32 = arith.constant 2 : i32
    %1 = arith.muli %0, %c2_i32 : i32
    %c1_i32_0 = arith.constant 1 : i32
    %2 = arith.minsi %1, %c1_i32_0 : i32
    %c0_i32 = arith.constant 0 : i32
    %c0_i32_1 = arith.constant 0 : i32
    %c0_i32_2 = arith.constant 0 : i32
    return %arg0, %c0_i32, %2, %c0_i32_1 : i32, i32, i32, i32
  }
  func.func @transform_3(%arg0: i32, %arg1: i32) -> (i32, i32, i32, i32) {
    %c1_i32 = arith.constant 1 : i32
    %0 = arith.addi %arg1, %c1_i32 : i32
    %c2_i32 = arith.constant 2 : i32
    %1 = arith.muli %0, %c2_i32 : i32
    %c1_i32_0 = arith.constant 1 : i32
    %2 = arith.minsi %1, %c1_i32_0 : i32
    %c0_i32 = arith.constant 0 : i32
    %c0_i32_1 = arith.constant 0 : i32
    %c0_i32_2 = arith.constant 0 : i32
    return %arg0, %c0_i32, %2, %c0_i32_1 : i32, i32, i32, i32
  }
  func.func @transform_4(%arg0: i32, %arg1: i32) -> (i32, i32, i32, i32) {
    %c0_i32 = arith.constant 0 : i32
    %c0_i32_0 = arith.constant 0 : i32
    %c0_i32_1 = arith.constant 0 : i32
    return %arg0, %arg1, %c0_i32, %c0_i32_0 : i32, i32, i32, i32
  }
}

</mosaic_0001>

<bundles_post_ra>
// kernel: tpu_custom_call.1
= control target key start
LH: loop header
LB: loop body
LE: loop exit
PB: predicated region body
PF: predicated region fallthrough
CT: control target
= control target key end

     0   :  { %s1760_s0 = inlined_call_operand.hbm [shape: f32[2,2,16,128], index: 0, kind: input, shape index: {}]   ;;  %s1761_s1 = inlined_call_operand.hbm [shape: f32[2,6,16,128], index: 1, kind: input, shape index: {}]   ;;  %s1762_s2 = inlined_call_operand.hbm [shape: f32[2,2,16,128], index: 2, kind: input, shape index: {}]   ;;  %s1763_s3 = inlined_call_operand.hbm [shape: f32[2,6,16,128], index: 3, kind: input, shape index: {}]   ;;  %s1764_s4 = inlined_call_operand.hbm [shape: f32[2,1,8,128], index: 4, kind: output, shape index: {}]  }
   0x1   :  { %1774 = sst [smem:[#allocation18_spill]] %s1760_s0 }
   0x2   :  { %1775 = sst [smem:[#allocation19_spill]] %s1761_s1 }
   0x3   :  { %1776 = sst [smem:[#allocation20_spill]] %s1762_s2 }
   0x4   :  { %9 = vsyncpa [#allocation3], 0 }
   0x5   :  { %11 = vsyncpa [#allocation3 + $0x1], 0 }
   0x6   :  { %12 = vsyncpa [#allocation6], 0 }
   0x7   :  { %14 = vsyncpa [#allocation6 + $0x1], 0 }
   0x8   :  { %15 = vsyncpa [#allocation9], 0 }
   0x9   :  { %17 = vsyncpa [#allocation9 + $0x1], 0 }
   0xa   :  { %18 = vsyncpa [#allocation4], 0 }
   0xb   :  { %20 = vsyncpa [#allocation4 + $0x1], 0  ;;  %s1220_s15 = smov 0   ;;  %s1222_s16 = smov 0  }
   0xc   :  { %s1224_s17 = smov 0   ;;  %s1226_s18 = smov 0  }
   0xd   :  { %s1228_s19 = smov 0   ;;  %s1230_s20 = smov 0  }
   0xe LB: > { %1777 = sst [smem:[#allocation15_spill]] %s1172_s17  ;;  %s1251_s21 = sadd.s32 4294967295, %s1184_s20   ;;  %s1184_s20 = sphi %s1230_s20, %s26_s20   ;;  %s1180_s19 = sphi %s1228_s19, %s1805_s19   ;;  %s1176_s18 = sphi %s1226_s18, %s1804_s18   ;;  %s1172_s17 = sphi %s1224_s17, %s1800_s17   ;;  %s1168_s16 = sphi %s1222_s16, %s1803_s16   ;;  %s1164_s15 = sphi %s1220_s15, %s1802_s15  }
   0xf   : > { %s845_s22 = sadd.s32 4294967294, %s1184_s20   ;;  %s38_s23 = sadd.s32 1, %s1180_s19 }
  0x10   : > { %s47_s24 = sadd.s32 1, %s1172_s17  ;;  %p40_p0 = scmp.ge.s32.totalorder %s38_s23, 2 }
  0x11   : > { %p54_p1 = scmp.ne.s32.totalorder %s1172_s17, %s1168_s16  ;;  %p55_p2 = scmp.eq.s32.totalorder %s1184_s20, 0 }
  0x12   : > { %p60_p3 = scmp.ne.s32.totalorder %s1168_s16, %s1164_s15  ;;  %s1807_s23 = smov (%p40_p0, %s38_s23), 0 }
  0x13   : > { %1778 = sst [smem:[#allocation16_spill]] %s1807_s23  ;;  %p1263_p4 = por %p55_p2, %p54_p1 }
  0x14   : > { %p61_p5 = scmp.eq.s32.totalorder %s1251_s21, 0  ;;  %s42_s26 = ssub.s32 %s1180_s19, %s1807_s23 }
  0x15   : > { %p186_p6 = scmp.eq.s32.totalorder %s1251_s21, 1  ;;  %p45_p7 = scmp.eq.s32.totalorder %s42_s26, 0 }
  0x16   : > { %p1271_p8 = por %p61_p5, %p60_p3  ;;  %p192_p10 = scmp.eq.s32.totalorder %s845_s22, 1 }
  0x17   : > { %p1275_p9 = por %p186_p6, %p54_p1  ;;  %p903_p13 = scmp.lt.s32.totalorder %s1184_s20, 2 }
  0x18   : > { %s1780_s27 = scalar_select %p1271_p8, 1, 0 }
  0x19   : > { %s1781_s28 = scalar_select %p1275_p9, 1, 0 }
  0x1a   : > { %s1280_s29 = scalar_select %p45_p7, %s1172_s17, %s47_s24  }
  0x1b   : > { %p1282_p11 = por %p192_p10, %p60_p3  ;;  %s1289_s5 = sand.u32 1, %s1172_s17  }
  0x1c   : > { %1782 = sst [smem:[#allocation17_spill]] %s1280_s29  ;;  %p1293_p0 = pnand %p903_p13, %p1263_p4 }
  0x1d   : > { %s1783_s30 = scalar_select %p1282_p11, 1, 0 }
  0x1e   : > { %s235_s7 = sand.u32 1, %s1184_s20   ;;  %s870_s8 = smul.u32 96, %s1289_s5 }
  0x1f   : > { %s1767_s9 = smul.u32 1536, %s1180_s19  ;;  %s1785_s1 = sld [smem:[#allocation19_spill]] }
  0x20   : > { %s239_s13 = scalar_lea.vmem [#allocation5], %s870_s8  ;;  %s1310_s22 = scalar_lea.sflag [#allocation6], %s235_s7 }
  0x21   : > { %s248_s14 = sshll.u32 %s239_s13, 4  ;;  %p1316_p3 = pneg %p1293_p0  ;;  %s1307_s14 = int_to_ptr.vmem [resolvable:$true] %s248_s14 }
  0x25   : > { %s1305_s12 = scalar_lea.hbm %s1785_s1, %s1767_s9  ;;  %s979_s8 = scalar_lea.hbm %s1785_s1, 3072 }
  0x26   : > { %s974_s24 = scalar_lea.hbm %s1305_s12, 1536  ;;  %p980_p6 = scmp.lt.u32.totalorder %s1305_s12, %s1785_s1 }
  0x27   : > { %p975_p2 = scmp.ne.s32.totalorder %s1305_s12, %s974_s24  ;;  %p981_p7 = scmp.lt.u32.totalorder %s979_s8, %s974_s24 }
  0x28   : > { %p983_p13 = scmp.lt.u32.totalorder %s974_s24, %s1305_s12 }
  0x29   : > { %p977_p4 = pnand %p1316_p3, %p975_p2  ;;  %p982_p10 = por %p981_p7, %p980_p6 }
  0x2b   : > { %p978_p5 = pneg %p977_p4  ;;  %p984_p12 = por %p983_p13, %p982_p10 }
  0x2d   : > { %p985_p1 = pnand %p984_p12, %p978_p5 }
  0x2f   : > { %988 = shalt.err (!%p985_p1)
}
  0x30   : > { %s989_s7 = scalar_lea.vmem %s1307_s14, 1536  ;;  %s1186_s26 = smov [#allocation5]  }
  0x31   : > { %p990_p2 = scmp.ne.s32.totalorder %s1307_s14, %s989_s7  ;;  %s994_s10 = sshll.u32 %s1186_s26, 4  ;;  %s995_s10 = int_to_ptr.vmem [resolvable:$false] %s994_s10 }
  0x32   : > { %s996_s11 = scalar_lea.vmem %s995_s10, 3072  ;;  %p997_p9 = scmp.lt.s32.totalorder %s1307_s14, %s995_s10 }
  0x33   : > { %p992_p4 = pnand %p990_p2, %p1316_p3  ;;  %p998_p8 = scmp.lt.s32.totalorder %s996_s11, %s989_s7 }
  0x35   : > { %p993_p11 = pneg %p992_p4  ;;  %p999_p6 = por %p998_p8, %p997_p9 }
  0x37   : > { %p1000_p7 = pnand %p999_p6, %p993_p11 }
  0x39   : > { %1003 = shalt.err (!%p1000_p7)
}
  0x3a   : > { %s1769_s24 = smov 128   ;;  %s1771_s8 = smov 8  }
  0x3b   : > { %892 = dma.hbm_to_vmem [thread:$0]  (!%p1293_p0), %s1305_s12, 1536, %s1307_s14, %s1310_s22, %s1769_s24, %s1769_s24, %s1771_s8  }
  0x3c   : > { %p308_p8 = scmp.lt.s32.totalorder %s1184_s20, 3  ;;  %p1787_p9 = scmp.ge.s32.totalorder %s1184_s20, 1 }
  0x3d   : > { %s848_s7 = sshll.u32 %s1289_s5, 5  ;;  %s864_s26 = sshll.u32 %s1180_s19, 9 }
  0x3e   : > { %p1346_p11 = pnand %p1787_p9, %p308_p8  ;;  %s1789_s0 = sld [smem:[#allocation18_spill]] }
  0x3f   : > { %s216_s1 = scalar_lea.vmem [#allocation2], %s848_s7  ;;  %s1359_s12 = sadd.s32 128, %s864_s26 }
  0x40   : > { %s1788_s13 = scalar_select %p1346_p11, 1, 0 }
  0x41   : > { %s225_s23 = sshll.u32 %s216_s1, 4  ;;  %s213_s14 = scalar_lea.sflag [#allocation3], %s1289_s5  ;;  %s1357_s23 = int_to_ptr.vmem [resolvable:$true] %s225_s23 }
  0x44   : > { %s1355_s9 = scalar_lea.hbm %s1789_s0, %s864_s26  ;;  %s1009_s11 = scalar_lea.hbm %s1789_s0, 1024 }
  0x45   : > { %s1004_s24 = scalar_lea.hbm %s1355_s9, 512  ;;  %p1010_p10 = scmp.lt.u32.totalorder %s1355_s9, %s1789_s0 }
  0x46   : > { %p1005_p12 = scmp.ne.s32.totalorder %s1355_s9, %s1004_s24  ;;  %p1011_p13 = scmp.lt.u32.totalorder %s1009_s11, %s1004_s24 }
  0x47   : > { %p1013_p4 = scmp.lt.u32.totalorder %s1004_s24, %s1355_s9 }
  0x48   : > { %p1007_p1 = pnand %p1005_p12, %p1316_p3  ;;  %p1012_p2 = por %p1011_p13, %p1010_p10 }
  0x4a   : > { %p1008_p5 = pneg %p1007_p1  ;;  %p1014_p6 = por %p1013_p4, %p1012_p2 }
  0x4c   : > { %p1015_p7 = pnand %p1014_p6, %p1008_p5 }
  0x4e   : > { %1018 = shalt.err (!%p1015_p7)
}
  0x4f   : > { %s1019_s1 = scalar_lea.vmem %s1357_s23, 512  ;;  %s1189_s8 = smov [#allocation2]  }
  0x50   : > { %p1020_p8 = scmp.ne.s32.totalorder %s1357_s23, %s1019_s1  ;;  %s1024_s7 = sshll.u32 %s1189_s8, 4  ;;  %s1025_s7 = int_to_ptr.vmem [resolvable:$false] %s1024_s7 }
  0x51   : > { %s1026_s17 = scalar_lea.vmem %s1025_s7, 1024  ;;  %p1027_p1 = scmp.lt.s32.totalorder %s1357_s23, %s1025_s7 }
  0x52   : > { %p1022_p9 = pnand %p1020_p8, %p1316_p3  ;;  %p1028_p11 = scmp.lt.s32.totalorder %s1026_s17, %s1019_s1 }
  0x54   : > { %p1023_p12 = pneg %p1022_p9  ;;  %p1029_p10 = por %p1028_p11, %p1027_p1 }
  0x56   : > { %p1030_p13 = pnand %p1029_p10, %p1023_p12 }
  0x58   : > { %1033 = shalt.err (!%p1030_p13)
}
  0x59   : > { %s1790_s29 = smov 8   ;;  %s1791_s24 = smov 128  }
  0x5a   : > { %889 = dma.hbm_to_vmem [thread:$0]  (!%p1293_p0), %s1355_s9, 512, %s1357_s23, %s213_s14, %s1791_s24, %s1791_s24, %s1790_s29  }
  0x5b   : > { %s1792_s2 = sld [smem:[#allocation20_spill]]  ;;  %s852_s1 = sshll.u32 %s1289_s5, 4 }
  0x5c   : > { %s262_s8 = scalar_lea.vmem [#allocation7], %s852_s1  ;;  %s872_s17 = smul.u32 48, %s1289_s5 }
  0x5d   : > { %s274_s7 = sshll.u32 %s262_s8, 4  ;;  %s1395_s7 = int_to_ptr.vmem [resolvable:$true] %s274_s7 }
  0x61   : > { %s1392_s11 = scalar_lea.hbm %s1792_s2, %s1359_s12  ;;  %s1039_s12 = scalar_lea.hbm %s1792_s2, 1024 }
  0x62   : > { %s1034_s0 = scalar_lea.hbm %s1392_s11, 256  ;;  %p1040_p4 = scmp.lt.u32.totalorder %s1392_s11, %s1792_s2 }
  0x63   : > { %p1035_p11 = scmp.ne.s32.totalorder %s1392_s11, %s1034_s0  ;;  %p1041_p6 = scmp.lt.u32.totalorder %s1039_s12, %s1034_s0 }
  0x64   : > { %p1043_p8 = scmp.lt.u32.totalorder %s1034_s0, %s1392_s11 }
  0x65   : > { %p1037_p5 = pnand %p1035_p11, %p1316_p3  ;;  %p1042_p7 = por %p1041_p6, %p1040_p4 }
  0x67   : > { %p1038_p2 = pneg %p1037_p5  ;;  %p1044_p9 = por %p1043_p8, %p1042_p7 }
  0x69   : > { %p1045_p12 = pnand %p1044_p9, %p1038_p2 }
  0x6b   : > { %1048 = shalt.err (!%p1045_p12)
}
  0x6c   : > { %s1049_s10 = scalar_lea.vmem %s1395_s7, 256  ;;  %s1190_s1 = smov [#allocation7]  }
  0x6d   : > { %p1050_p1 = scmp.ne.s32.totalorder %s1395_s7, %s1049_s10  ;;  %s1054_s8 = sshll.u32 %s1190_s1, 4  ;;  %s1055_s8 = int_to_ptr.vmem [resolvable:$false] %s1054_s8 }
  0x6e   : > { %s1056_s23 = scalar_lea.vmem %s1055_s8, 512  ;;  %p1057_p11 = scmp.lt.s32.totalorder %s1395_s7, %s1055_s8 }
  0x6f   : > { %p1052_p10 = pnand %p1050_p1, %p1316_p3  ;;  %p1058_p5 = scmp.lt.s32.totalorder %s1056_s23, %s1049_s10 }
  0x71   : > { %p1053_p13 = pneg %p1052_p10  ;;  %p1059_p4 = por %p1058_p5, %p1057_p11 }
  0x73   : > { %p1060_p6 = pnand %p1059_p4, %p1053_p13 }
  0x75   : > { %1063 = shalt.err (!%p1060_p6)
}
  0x76   : > { %s1191_s0 = smov 256   ;;  %s1793_s9 = smul.u32 1536, %s1180_s19 }
  0x77   : > { %895 = dma.hbm_to_vmem [thread:$0]  (!%p1293_p0), %s1392_s11, 256, %s1395_s7, %s1310_s22, %s1191_s0, %s1791_s24, %s1790_s29  }
  0x78   : > { %s868_s12 = sadd.s32 128, %s1793_s9  ;;  %s288_s1 = scalar_lea.vmem [#allocation8], %s872_s17 }
  0x79   : > { %s1428_s10 = scalar_lea.hbm %s1763_s3, %s868_s12  ;;  %s300_s8 = sshll.u32 %s288_s1, 4  ;;  %s1432_s8 = int_to_ptr.vmem [resolvable:$true] %s300_s8 }
  0x7a   : > { %s285_s23 = scalar_lea.sflag [#allocation9], %s1289_s5  ;;  %s1064_s2 = scalar_lea.hbm %s1428_s10, 768 }
  0x7b   : > { %p1065_p2 = scmp.ne.s32.totalorder %s1428_s10, %s1064_s2  ;;  %s1069_s7 = scalar_lea.hbm %s1763_s3, 3072 }
  0x7c   : > { %p1070_p9 = scmp.lt.u32.totalorder %s1428_s10, %s1763_s3  ;;  %p1071_p12 = scmp.lt.u32.totalorder %s1069_s7, %s1064_s2 }
  0x7d   : > { %p1067_p7 = pnand %p1065_p2, %p1316_p3  ;;  %p1073_p10 = scmp.lt.u32.totalorder %s1064_s2, %s1428_s10 }
  0x7e   : > { %p1072_p1 = por %p1071_p12, %p1070_p9 }
  0x7f   : > { %p1068_p8 = pneg %p1067_p7 }
  0x80   : > { %p1074_p13 = por %p1073_p10, %p1072_p1 }
  0x82   : > { %p1075_p11 = pnand %p1074_p13, %p1068_p8 }
  0x84   : > { %1078 = shalt.err (!%p1075_p11)
}
  0x85   : > { %s1079_s17 = scalar_lea.vmem %s1432_s8, 768  ;;  %s1192_s14 = smov [#allocation8]  }
  0x86   : > { %p1080_p5 = scmp.ne.s32.totalorder %s1432_s8, %s1079_s17  ;;  %s1084_s26 = sshll.u32 %s1192_s14, 4  ;;  %s1085_s26 = int_to_ptr.vmem [resolvable:$false] %s1084_s26 }
  0x87   : > { %s1086_s1 = scalar_lea.vmem %s1085_s26, 1536  ;;  %p1087_p2 = scmp.lt.s32.totalorder %s1432_s8, %s1085_s26 }
  0x88   : > { %p1082_p4 = pnand %p1080_p5, %p1316_p3  ;;  %p1088_p7 = scmp.lt.s32.totalorder %s1086_s1, %s1079_s17 }
  0x8a   : > { %p1083_p6 = pneg %p1082_p4  ;;  %p1089_p9 = por %p1088_p7, %p1087_p2 }
  0x8c   : > { %p1090_p12 = pnand %p1089_p9, %p1083_p6 }
  0x8e   : > { %1093 = shalt.err (!%p1090_p12)
}
  0x8f   : > { %898 = dma.hbm_to_vmem [thread:$0]  (!%p1293_p0), %s1428_s10, 768, %s1432_s8, %s285_s23, %s1191_s0, %s1791_s24, %s1790_s29  }
  0x90   : > { %p1794_p3 = scmp.ne.s32.totalorder %s1788_s13, 0 }
  0x91   : > { %s1464_s2 = sand.u32 (!%p1794_p3), 1, %s1168_s16   ;;  %p1795_p8 = scmp.ne.s32.totalorder (!%p1794_p3), %s1780_s27, 0 }
  0x92   : > { %312 = sbr.rel (%p1794_p3) target bundleno = 342 (0x156), region = 36  ;;  %s857_s25 = sshll.u32 (!%p1794_p3), %s1464_s2, 5 }
  0x93   : > { %s315_s22 = scalar_lea.sflag (!%p1794_p3), [#allocation3], %s1464_s2  ;;  %s1468_s6 = scalar_lea.vmem (!%p1794_p3), [#allocation2], %s857_s25 }
  0x99   : > { %1147 = dma.done.wait (%p1795_p8), %s315_s22, 512  }
  0x9a   : > { %1149 = vsyncadd (%p1795_p8), %s315_s22, 4294966784  ;;  %s323_s5 = sand.u32 1, %s1251_s21   ;;  %s874_s13 = smul.u32 96, %s1464_s2 }
  0x9b   : > { %s324_s29 = scalar_lea.sflag [#allocation6], %s323_s5 }
  0x9c   : > { %s1476_s24 = scalar_lea.vmem [#allocation5], %s874_s13 }
  0x9d   : > { %1151 = dma.done.wait (%p1795_p8), %s324_s29, 1792  }
  0x9e   : > { %1153 = vsyncadd (%p1795_p8), %s324_s29, 4294965504  ;;  %s858_s0 = sshll.u32 %s1464_s2, 4  ;;  %s875_s10 = smul.u32 48, %s1464_s2 }
  0x9f   : > { %s1484_s8 = scalar_lea.vmem [#allocation7], %s858_s0  ;;  %s342_s23 = scalar_lea.sflag [#allocation9], %s1464_s2 }
  0xa0   : > { %s1487_s11 = scalar_lea.vmem [#allocation8], %s875_s10 }
  0xa1   : > { %1155 = dma.done.wait (%p1795_p8), %s342_s23, 768  }
  0xa2   : > { %1157 = vsyncadd (%p1795_p8), %s342_s23, 4294966528  ;;  %v1494_v0 = vld [vmem:[%s1476_s24 + $0x10] sm:$0xff]  ;;  %v1497_v1 = vld [vmem:[%s1476_s24] sm:$0xff]  ;;  %s1193_s21 = smov 127   ;;  %v395_v16 = vlaneseq  ;;  %s859_s27 = sshll.u32 %s1464_s2, 3 }
  0xa3   : > { %478 = vrot.lane.b32.xlu1 %v1494_v0, %s1193_s21  ;;  %456 = vrot.lane.b32.xlu0 %v1497_v1, %s1193_s21  ;;  %v1502_v2 = vld [vmem:[%s1476_s24 + $0x18] sm:$0xff]  ;;  %v1505_v3 = vld [vmem:[%s1476_s24 + $0x8] sm:$0xff]  ;;  %v482_v19 = vrot.slane %v1494_v0, 1  ;;  %v460_v24 = vrot.slane %v1497_v1, 1  ;;  %s861_s7 = sshll.u32 %s1176_s18, 7  ;;  %s384_s9 = scalar_lea.vmem [#allocation10], %s859_s27 }
  0xa4   : > { %v1510_v4 = vld [vmem:[%s1476_s24 + $0x38] sm:$0xff]  ;;  %v1513_v5 = vld [vmem:[%s1476_s24 + $0x30] sm:$0xff]  ;;  %v1518_v6 = vld [vmem:[%s1476_s24 + $0x48] sm:$0xff]  ;;  %v1558_v17 = vshrl.u32 %v395_v16, 7  ;;  %v483_v21 = vrot.slane %v1502_v2, 1  ;;  %v461_v25 = vrot.slane %v1505_v3, 1  ;;  %s1711_s26 = scalar_lea.hbm %s1764_s4, %s861_s7 }
  0xa5   : > { %v1521_v7 = vld [vmem:[%s1476_s24 + $0x40] sm:$0xff]  ;;  %v1526_v8 = vld [vmem:[%s1476_s24 + $0x28] sm:$0xff]  ;;  %v1534_v10 = vld [vmem:[%s1476_s24 + $0x58] sm:$0xff]  ;;  %v579_v30 = vrot.slane %v1510_v4, 1  ;;  %v578_v32 = vrot.slane %v1513_v5, 1  ;;  %v601_v33 = vrot.slane %v1518_v6, 1 }
  0xa6   : > { %v1529_v9 = vld [vmem:[%s1476_s24 + $0x20] sm:$0xff]  ;;  %v1537_v11 = vld [vmem:[%s1476_s24 + $0x50] sm:$0xff]  ;;  %v1542_v12 = vld [vmem:[%s1468_s6 + $0x8] sm:$0xff]  ;;  %v1561_v18 = vadd.s32 8, %v1558_v17  ;;  %v1565_v20 = vsub.s32 0, %v1558_v17  ;;  %vm443_vm0 = vcmp.lt.s32.totalorder %v1558_v17, 7 }
  0xa7   : > { %480 = vrot.lane.b32.xlu1 %v1502_v2, %s1193_s21  ;;  %458 = vrot.lane.b32.xlu0 %v1505_v3, %s1193_s21  ;;  %v1545_v13 = vld [vmem:[%s1468_s6] sm:$0xff]  ;;  %v1550_v14 = vld [vmem:[%s1468_s6 + $0x18] sm:$0xff]  ;;  %v484_v27 = vsel %vm443_vm0, %v482_v19, %v483_v21  ;;  %v485_v28 = vsel %vm443_vm0, %v483_v21, %v482_v19  ;;  %v600_v35 = vrot.slane %v1521_v7, 1  ;;  %v463_v36 = vsel %vm443_vm0, %v461_v25, %v460_v24  ;;  %s689_s12 = sshll.u32 %s384_s9, 4  ;;  %s675_s1 = scalar_lea.sflag [#allocation4], %s1464_s2  ;;  %s1713_s12 = int_to_ptr.vmem [resolvable:$true] %s689_s12 }
  0xa8   : > { %v1553_v15 = vld [vmem:[%s1468_s6 + $0x10] sm:$0xff]  ;;  %v428_v22 = vld [vmem:[%s1487_s11 + $0x8] sm:$0xff]  ;;  %vm408_vm1 = vcmp.eq.s32.totalorder %v1561_v18, 15  ;;  %v430_v31 = vld [vmem:[%s1487_s11 + $0x18] sm:$0xff]  ;;  %v509_v37 = vrot.slane %v1526_v8, 1  ;;  %v508_v39 = vrot.slane %v1529_v9, 1  ;;  %v462_v40 = vsel %vm443_vm0, %v460_v24, %v461_v25 }
  0xa9   : > { %v427_v23 = vld [vmem:[%s1487_s11] sm:$0xff]  ;;  %v489_v26 = vrot.slane %v428_v22, %v1565_v20  ;;  %v429_v38 = vld [vmem:[%s1487_s11 + $0x10] sm:$0xff]  ;;  %v496_v42 = vsub.f32 %v1494_v0, %v484_v27  ;;  %v585_v43 = vrot.slane %v430_v31, %v1565_v20  ;;  %v581_v46 = vsel %vm443_vm0, %v579_v30, %v578_v32  ;;  %v432_v52 = vld [vmem:[%s1487_s11 + $0x28] sm:$0xff]  ;;  %s1094_s25 = scalar_lea.vmem %s1713_s12, 128  ;;  %p1796_p1 = scmp.ne.s32.totalorder %s1781_s28, 0 }
  0xaa   : > { %v467_v29 = vrot.slane %v427_v23, %v1565_v20  ;;  %v431_v34 = vld [vmem:[%s1487_s11 + $0x20] sm:$0xff]  ;;  %v603_v47 = vsel %vm443_vm0, %v601_v33, %v600_v35  ;;  %v515_v48 = vrot.slane %v429_v38, %v1565_v20  ;;  %v474_v49 = vsub.f32 %v1497_v1, %v462_v40  ;;  %p1095_p0 = scmp.ne.s32.totalorder %s1713_s12, %s1094_s25  ;;  %s1194_s18 = smov [#allocation10]  }
  0xab   : > { %576 = vrot.lane.b32.xlu1 %v1510_v4, %s1193_s21  ;;  %574 = vrot.lane.b32.xlu0 %v1513_v5, %s1193_s21  ;;  %v491_v41 = vsel %vm408_vm1, %v489_v26, %v485_v28  ;;  %v607_v44 = vrot.slane %v431_v34, %v1565_v20  ;;  %v511_v50 = vsel %vm443_vm0, %v509_v37, %v508_v39  ;;  %v627_v51 = vrot.slane %v1534_v10, 1  ;;  %s1098_s22 = sshll.u32 %s1194_s18, 4  ;;  %s1099_s22 = int_to_ptr.vmem [resolvable:$false] %s1098_s22 }
  0xac   : > { %v469_v45 = vsel %vm408_vm1, %v467_v29, %v463_v36  ;;  %v626_v53 = vrot.slane %v1537_v11, 1  ;;  %v497_v54 = vsub.f32 %v1502_v2, %v491_v41  ;;  %v580_v55 = vsel %vm443_vm0, %v578_v32, %v579_v30  ;;  %p1096_p10 = pnand %p1095_p0, %p1796_p1  ;;  %s1100_s6 = scalar_lea.vmem %s1099_s22, 256 }
  0xad   : > { %v602_v56 = vsel %vm443_vm0, %v600_v35, %v601_v33  ;;  %v475_v57 = vsub.f32 %v1505_v3, %v469_v45  ;;  %v587_v58 = vsel %vm408_vm1, %v585_v43, %v581_v46  ;;  %v609_v59 = vsel %vm408_vm1, %v607_v44, %v603_v47  ;;  %p1101_p11 = scmp.lt.s32.totalorder %s1713_s12, %s1099_s22  ;;  %p1102_p5 = scmp.lt.s32.totalorder %s1100_s6, %s1094_s25 }
  0xae   : > { %v510_v60 = vsel %vm443_vm0, %v508_v39, %v509_v37  ;;  %v498_v61 = vand.u32 2147483647, %v496_v42  ;;  %v517_v62 = vsel %vm408_vm1, %v515_v48, %v511_v50  ;;  %v633_v63 = vrot.slane %v432_v52, %v1565_v20  ;;  %p1097_p13 = pneg %p1096_p10 }
  0xaf   : > { %598 = vrot.lane.b32.xlu1 %v1518_v6, %s1193_s21  ;;  %596 = vrot.lane.b32.xlu0 %v1521_v7, %s1193_s21  ;;  %v476_v19 = vand.u32 2147483647, %v474_v49  ;;  %v592_v21 = vsub.f32 %v1513_v5, %v580_v55  ;;  %v614_v22 = vsub.f32 %v1521_v7, %v602_v56  ;;  %v629_v23 = vsel %vm443_vm0, %v627_v51, %v626_v53  ;;  %p1103_p4 = por %p1102_p5, %p1101_p11 }
  0xb0   : > { %v593_v26 = vsub.f32 %v1510_v4, %v587_v58  ;;  %v615_v27 = vsub.f32 %v1518_v6, %v609_v59  ;;  %v522_v28 = vsub.f32 %v1529_v9, %v510_v60  ;;  %v628_v29 = vsel %vm443_vm0, %v626_v53, %v627_v51 }
  0xb1   : > { %v499_v30 = vand.u32 2147483647, %v497_v54  ;;  %v477_v31 = vand.u32 2147483647, %v475_v57  ;;  %v523_v32 = vsub.f32 %v1526_v8, %v517_v62  ;;  %v635_v33 = vsel %vm408_vm1, %v633_v63, %v629_v23  ;;  %p1104_p6 = pnand %p1103_p4, %p1097_p13 }
  0xb2   : > { %v594_v34 = vand.u32 2147483647, %v592_v21  ;;  %v616_v35 = vand.u32 2147483647, %v614_v22  ;;  %v640_v36 = vsub.f32 %v1537_v11, %v628_v29  ;;  %v595_v39 = vand.u32 2147483647, %v593_v26 }
  0xb3   : > { %506 = vrot.lane.b32.xlu1 %v1526_v8, %s1193_s21  ;;  %504 = vrot.lane.b32.xlu0 %v1529_v9, %s1193_s21  ;;  %v617_v40 = vand.u32 2147483647, %v615_v27  ;;  %v524_v41 = vand.u32 2147483647, %v522_v28  ;;  %v502_v42 = vadd.f32 %v498_v61, %v476_v19  ;;  %v503_v43 = vadd.f32 %v499_v30, %v477_v31 }
  0xb4   : > { %v525_v44 = vand.u32 2147483647, %v523_v32  ;;  %v641_v45 = vsub.f32 %v1534_v10, %v635_v33  ;;  %v620_v46 = vadd.f32 %v616_v35, %v594_v34  ;;  %v642_v47 = vand.u32 2147483647, %v640_v36  ;;  %v425_v34 = vld [vmem:[%s1484_s8] sm:$0xff] }
  0xb5   : > { %v621_v50 = vadd.f32 %v617_v40, %v595_v39  ;;  %v528_v51 = vadd.f32 %v524_v41, %v502_v42  ;;  %v442_v59 = vrot.slane %v1542_v12, 1  ;;  %v441_v60 = vrot.slane %v1545_v13, 1 }
  0xb6   : > { %v529_v52 = vadd.f32 %v525_v44, %v503_v43  ;;  %v643_v53 = vand.u32 2147483647, %v641_v45  ;;  %v646_v58 = vadd.f32 %v642_v47, %v620_v46  ;;  %v561_v19 = vrot.slane %v1550_v14, 1 }
  0xb7   : > { %624 = vrot.lane.b32.xlu1 %v1534_v10, %s1193_s21  ;;  %622 = vrot.lane.b32.xlu0 %v1537_v11, %s1193_s21  ;;  %v536_v63 = vmul.f32 -0.33333334, %v528_v51  ;;  %v560_v21 = vrot.slane %v1553_v15, 1  ;;  %v445_v26 = vsel %vm443_vm0, %v442_v59, %v441_v60  ;;  %vm406_vm2 = vcmp.ge.s32.totalorder %v1561_v18, 15 }
  0xb8   : > { %v537_v22 = vmul.f32 -0.33333334, %v529_v52 }
  0xb9   : > { %v538_v31 = vmul.f32 1.442695, %v536_v63 }
  0xba   : > { %v540_v35 = vmul.f32 1.442695, %v537_v22 }
  0xbb   : > { %435 = vrot.lane.b32.xlu1 %v1542_v12, %s1193_s21  ;;  %433 = vrot.lane.b32.xlu0 %v1545_v13, %s1193_s21  ;;  %958 = vpow2.f32 %v538_v31 }
  0xbc   : > { %960 = vpow2.f32 %v540_v35 }
  0xbf   : > { %554 = vrot.lane.b32.xlu1 %v1550_v14, %s1193_s21  ;;  %552 = vrot.lane.b32.xlu0 %v1553_v15, %s1193_s21 }
 0x115   : > { %v479_v24 = vpop.permute.xlu1 %478  ;;  %v457_v25 = vpop.permute.xlu0 %456 }
 0x116   : > { %v492_v54 = vsub.f32 %v1494_v0, %v479_v24  ;;  %v470_v55 = vsub.f32 %v1497_v1, %v457_v25  ;;  %v647_v0 = vadd.f32 %v643_v53, %v621_v50  ;;  %v654_v25 = vmul.f32 -0.33333334, %v646_v58 }
 0x118   : > { %v494_v1 = vand.u32 2147483647, %v492_v54  ;;  %v472_v23 = vand.u32 2147483647, %v470_v55  ;;  %v655_v36 = vmul.f32 -0.33333334, %v647_v0 }
 0x119   : > { %v481_v37 = vpop.permute.xlu1 %480  ;;  %v459_v38 = vpop.permute.xlu0 %458  ;;  %v656_v42 = vmul.f32 1.442695, %v654_v25 }
 0x11a   : > { %v493_v56 = vsub.f32 %v1502_v2, %v481_v37  ;;  %v471_v57 = vsub.f32 %v1505_v3, %v459_v38  ;;  %v426_v37 = vld [vmem:[%s1484_s8 + $0x8] sm:$0xff] }
 0x11b   : > { %v567_v51 = vrot.slane %v426_v37, %v1565_v20  ;;  %962 = vpow2.f32 %v656_v42 }
 0x11c   : > { %v495_v2 = vand.u32 2147483647, %v493_v56  ;;  %v473_v24 = vand.u32 2147483647, %v471_v57 }
 0x11d   : > { %v577_v48 = vpop.permute.xlu1 %576  ;;  %v575_v49 = vpop.permute.xlu0 %574 }
 0x11e   : > { %v589_v27 = vsub.f32 %v1510_v4, %v577_v48  ;;  %v500_v4 = vadd.f32 %v494_v1, %v472_v23  ;;  %v501_v38 = vadd.f32 %v495_v2, %v473_v24  ;;  %v444_v23 = vsel %vm443_vm0, %v441_v60, %v442_v59 }
 0x11f   : > { %v562_v59 = vsel %vm443_vm0, %v560_v21, %v561_v19 }
 0x120   : > { %v591_v43 = vand.u32 2147483647, %v589_v27 }
 0x121   : > { %v599_v61 = vpop.permute.xlu1 %598  ;;  %v597_v62 = vpop.permute.xlu0 %596 }
 0x122   : > { %v611_v3 = vsub.f32 %v1518_v6, %v599_v61  ;;  %v610_v28 = vsub.f32 %v1521_v7, %v597_v62  ;;  %v563_v6 = vsel %vm443_vm0, %v561_v19, %v560_v21  ;;  %v588_v7 = vsub.f32 %v1513_v5, %v575_v49 }
 0x123   : > { %v658_v5 = vmul.f32 1.442695, %v655_v36  ;;  %v569_v0 = vsel %vm408_vm1, %v567_v51, %v563_v6  ;;  %v452_v6 = vsub.f32 %v1545_v13, %v444_v23 }
 0x124   : > { %v613_v39 = vand.u32 2147483647, %v611_v3  ;;  %v612_v44 = vand.u32 2147483647, %v610_v28  ;;  %v590_v49 = vand.u32 2147483647, %v588_v7 }
 0x125   : > { %v507_v29 = vpop.permute.xlu1 %506  ;;  %v505_v30 = vpop.permute.xlu0 %504  ;;  %964 = vpow2.f32 %v658_v5 }
 0x126   : > { %v519_v32 = vsub.f32 %v1526_v8, %v507_v29  ;;  %v518_v33 = vsub.f32 %v1529_v9, %v505_v30  ;;  %v449_v8 = vrot.slane %v425_v34, %v1565_v20  ;;  %v619_v52 = vadd.f32 %v613_v39, %v591_v43  ;;  %v959_v30 = vpop.eup %958 }
 0x127   : > { %v618_v56 = vadd.f32 %v612_v44, %v590_v49  ;;  %v396_v20 = vand.u32 127, %v395_v16  ;;  %v961_v21 = vpop.eup %960 }
 0x128   : > { %v521_v40 = vand.u32 2147483647, %v519_v32  ;;  %v520_v41 = vand.u32 2147483647, %v518_v33  ;;  %v451_v61 = vsel %vm408_vm1, %v449_v8, %v445_v26  ;;  %v571_v26 = vsub.f32 %v1550_v14, %v569_v0 }
 0x129   : > { %v625_v45 = vpop.permute.xlu1 %624  ;;  %v623_v46 = vpop.permute.xlu0 %622  ;;  %v453_v24 = vsub.f32 %v1542_v12, %v451_v61  ;;  %vm404_vm3 = vcmp.ge.s32.totalorder %v396_v20, 15  ;;  %v570_v32 = vsub.f32 %v1553_v15, %v562_v59 }
 0x12a   : > { %v527_v47 = vadd.f32 %v521_v40, %v501_v38  ;;  %v526_v9 = vadd.f32 %v520_v41, %v500_v4  ;;  %v637_v48 = vsub.f32 %v1534_v10, %v625_v45  ;;  %v636_v50 = vsub.f32 %v1537_v11, %v623_v46 }
 0x12b   : > { %v573_v19 = vsel %vm406_vm2, 0.0, %v571_v26  ;;  %v664_v38 = vand.u32 2147483647, %v570_v32 }
 0x12c   : > { %v531_v53 = vmul.f32 -0.33333334, %v527_v47  ;;  %v530_v54 = vmul.f32 -0.33333334, %v526_v9  ;;  %v639_v55 = vand.u32 2147483647, %v637_v48 }
 0x12d   : > { %v638_v57 = vand.u32 2147483647, %v636_v50  ;;  %v436_v58 = vpop.permute.xlu1 %435  ;;  %v434_v62 = vpop.permute.xlu0 %433  ;;  %v665_v7 = vand.u32 2147483647, %v573_v19 }
 0x12e   : > { %v534_v10 = vmul.f32 1.442695, %v531_v53  ;;  %v532_v11 = vmul.f32 1.442695, %v530_v54  ;;  %v645_v63 = vadd.f32 %v639_v55, %v619_v52  ;;  %v438_v16 = vsub.f32 %v1542_v12, %v436_v58 }
 0x12f   : > { %v644_v22 = vadd.f32 %v638_v57, %v618_v56  ;;  %v437_v28 = vsub.f32 %v1545_v13, %v434_v62  ;;  %v455_v12 = vsel %vm406_vm2, 0.0, %v453_v24 }
 0x130   : > { %966 = vpow2.f32 %v534_v10  ;;  %v649_v1 = vmul.f32 -0.33333334, %v645_v63  ;;  %v440_v17 = vsel %vm404_vm3, 0.0, %v438_v16  ;;  %v547_v34 = vand.u32 2147483647, %v455_v12 }
 0x131   : > { %968 = vpow2.f32 %v532_v11  ;;  %v648_v2 = vmul.f32 -0.33333334, %v644_v22  ;;  %v555_v3 = vpop.permute.xlu1 %554  ;;  %v553_v27 = vpop.permute.xlu0 %552  ;;  %v439_v33 = vsel %vm404_vm3, 0.0, %v437_v28  ;;  %v543_v4 = vand.u32 2147483647, %v440_v17 }
 0x132   : > { %v652_v25 = vmul.f32 1.442695, %v649_v1  ;;  %v557_v29 = vsub.f32 %v1550_v14, %v555_v3  ;;  %v556_v31 = vsub.f32 %v1553_v15, %v553_v27  ;;  %v963_v14 = vpop.eup %962  ;;  %v546_v15 = vand.u32 2147483647, %v452_v6 }
 0x133   : > { %v650_v60 = vmul.f32 1.442695, %v648_v2  ;;  %v965_v36 = vpop.eup %964  ;;  %v542_v39 = vand.u32 2147483647, %v439_v33  ;;  %v549_v43 = vmul.f32 %v961_v21, %v547_v34  ;;  %v666_v47 = vmul.f32 %v963_v14, %v664_v38 }
 0x134   : > { %970 = vpow2.f32 %v652_v25  ;;  %v559_v35 = vsel %vm404_vm3, 0.0, %v557_v29  ;;  %v558_v13 = vsel %vm404_vm3, 0.0, %v556_v31  ;;  %v667_v44 = vmul.f32 %v965_v36, %v665_v7 }
 0x135   : > { %972 = vpow2.f32 %v650_v60  ;;  %v661_v18 = vand.u32 2147483647, %v559_v35  ;;  %v660_v41 = vand.u32 2147483647, %v558_v13  ;;  %v548_v8 = vmul.f32 %v959_v30, %v546_v15 }
 0x13a   : > { %v967_v37 = vpop.eup %966 }
 0x13b   : > { %v969_v40 = vpop.eup %968  ;;  %v545_v42 = vmul.f32 %v967_v37, %v543_v4 }
 0x13c   : > { %v544_v46 = vmul.f32 %v969_v40, %v542_v39 }
 0x13d   : > { %v551_v5 = vadd.f32 %v549_v43, %v545_v42 }
 0x13e   : > { %v971_v45 = vpop.eup %970  ;;  %v550_v51 = vadd.f32 %v548_v8, %v544_v46 }
 0x13f   : > { %v973_v9 = vpop.eup %972  ;;  %v663_v48 = vmul.f32 %v971_v45, %v661_v18 }
 0x140   : > { %v662_v50 = vmul.f32 %v973_v9, %v660_v41 }
 0x141   : > { %v669_v49 = vadd.f32 %v667_v44, %v663_v48 }
 0x142   : > { %v668_v52 = vadd.f32 %v666_v47, %v662_v50 }
 0x143   : > { %v671_v53 = vadd.f32 %v669_v49, %v551_v5 }
 0x144   : > { %v670_v54 = vadd.f32 %v668_v52, %v550_v51 }
 0x146   : > { %v672_v55 = vadd.f32 %v671_v53, %v670_v54 }
 0x148   : > { %673 = vst [vmem:[%s384_s9] sm:$0xff] %v672_v55 }
 0x149   : > { %1107 = shalt.err (!%p1104_p6)
}
 0x14a   : > { %s1108_s2 = scalar_lea.hbm %s1711_s26, 128  ;;  %s1112_s29 = scalar_lea.hbm %s1764_s4, 256 }
 0x14b   : > { %p1109_p2 = scmp.ne.s32.totalorder %s1711_s26, %s1108_s2  ;;  %p1113_p12 = scmp.lt.u32.totalorder %s1711_s26, %s1764_s4 }
 0x14c   : > { %p1114_p3 = scmp.lt.u32.totalorder %s1112_s29, %s1108_s2  ;;  %p1116_p0 = scmp.lt.u32.totalorder %s1108_s2, %s1711_s26 }
 0x14d   : > { %p1110_p7 = pnand %p1109_p2, %p1796_p1 }
 0x14e   : > { %p1115_p8 = por %p1114_p3, %p1113_p12 }
 0x14f   : > { %p1111_p9 = pneg %p1110_p7 }
 0x150   : > { %p1117_p10 = por %p1116_p0, %p1115_p8 }
 0x152   : > { %p1118_p13 = pnand %p1117_p10, %p1111_p9 }
 0x154   : > { %1121 = shalt.err (!%p1118_p13)
}
 0x155   : > { %884 = dma.vmem_to_hbm [thread:$0]  (%p1796_p1), %s1713_s12, 128, %s1711_s26, %s675_s1  }
 0x156 PF: > { %s701_s10 = sand.u32 1, %s1164_s15   ;;  %p1797_p11 = scmp.ne.s32.totalorder %s1783_s30, 0 }
 0x157   : > { %p1798_p5 = scmp.ge.s32.totalorder %s1184_s20, 2  ;;  %s702_s8 = scalar_lea.sflag [#allocation4], %s701_s10 }
 0x159   : > { %p900_p4 = pnand %p1798_p5, %p1797_p11 }
 0x15b   : > { %1159 = dma.done.wait (!%p900_p4), %s702_s8, 128  }
 0x15c   : > { %1161 = vsyncadd (!%p900_p4), %s702_s8, 4294967168  ;;  %s26_s20 = sadd.s32 1, %s1184_s20   ;;  %s1799_s23 = sld [smem:[#allocation15_spill]] }
 0x15d   : > { %p23_p6 = scmp.ge.s32.totalorder %s26_s20, 4   ;;  %s1800_s17 = sld [smem:[#allocation17_spill]] }
 0x15e   : > { %s1801_s28 = sld [smem:[#allocation16_spill]]  ;;  %s1802_s15 = smov %s1168_s16 }
 0x15f   : > { %s1804_s18 = smov %s1180_s19  ;;  %25 = sbr.rel (!%p23_p6) target bundleno = 14 (0xe), region = 118 }
 0x162   : > { %s1803_s16 = smov %s1799_s23 }
 0x164   : > { %s1805_s19 = smov %s1801_s28 }
 0x166   :  { %707 = vsyncpa [#allocation3], 1 }
 0x167   :  { %709 = vsyncpa [#allocation3 + $0x1], 1 }
 0x168   :  { %710 = vsyncpa [#allocation6], 1 }
 0x169   :  { %712 = vsyncpa [#allocation6 + $0x1], 1 }
 0x16a   :  { %713 = vsyncpa [#allocation9], 1 }
 0x16b   :  { %715 = vsyncpa [#allocation9 + $0x1], 1 }
 0x16c   :  { %716 = vsyncpa [#allocation4], 1 }
 0x16d   :  { %718 = vsyncpa [#allocation4 + $0x1], 1 }

</bundles_post_ra>
